<compile_context>
chip_gen: v5e
topology: v5e:2x2
jax: 0.10.0
libtpu: 0.0.40
codegen_flags: <defaults>
</compile_context>

<pallas_src>
import functools

import jax
import jax.numpy as jnp
from jax.experimental import pallas as pl
from jax.experimental.pallas import tpu as pltpu


def _standardize(x, *, eps, num_features):
    """Channel-wise standardization of a (C, T) f32 tile.

    Matches torch: (x - x.mean(dim=C)) / (x.std(dim=C, unbiased=True) + eps).
    """
    mean = jnp.mean(x, axis=0, keepdims=True)                          # (1, T)
    xc = x - mean
    var = jnp.sum(xc * xc, axis=0, keepdims=True) * (1.0 / (num_features - 1))
    std = jnp.sqrt(var)
    # Exact divide (no approx reciprocal): correctness > a hidden VALU op.
    return xc / (std + eps)


def _spatial_norm_interp_kernel(sel_ref, x_ref, w_ref, b_ref, o_ref, *,
                                eps, num_features, hw_small):
    # sel_ref: (1, T) int32   -- flat (hs*ws) source index for each pixel of this tile
    # x_ref  : (1, C, T)      -- input pixels for one batch element / one pixel tile
    # w_ref  : (1, C, hs*ws)  -- small, unexpanded spatial weight map
    # b_ref  : (1, C, hs*ws)  -- small, unexpanded spatial bias map
    # o_ref  : (1, C, T)
    x = x_ref[0].astype(jnp.float32)                                   # (C, T)
    x_std = _standardize(x, eps=eps, num_features=num_features)

    # Nearest-neighbour expansion of the small maps onto this pixel tile via a 0/1
    # selection matmul on the MXU (exact: exactly one nonzero per output column).
    tile = sel_ref.shape[-1]
    onehot = (sel_ref[...] ==
              jax.lax.broadcasted_iota(jnp.int32, (hw_small, tile), 0)
              ).astype(jnp.float32)                                    # (hs*ws, T)
    w = jnp.dot(w_ref[0].astype(jnp.float32), onehot,
                preferred_element_type=jnp.float32)                    # (C, T)
    b = jnp.dot(b_ref[0].astype(jnp.float32), onehot,
                preferred_element_type=jnp.float32)                    # (C, T)

    o_ref[0] = (w * x_std + b).astype(o_ref.dtype)


def _spatial_norm_full_kernel(x_ref, w_ref, b_ref, o_ref, *, eps, num_features):
    # Weight/bias already at full resolution: no interpolation needed.
    x = x_ref[0].astype(jnp.float32)                                   # (C, T)
    x_std = _standardize(x, eps=eps, num_features=num_features)
    o_ref[0] = (w_ref[0].astype(jnp.float32) * x_std
                + b_ref[0].astype(jnp.float32)).astype(o_ref.dtype)


def _choose_tile_hw(hw, per_lane_bytes):
    # Keep the per-grid-step VMEM working set (double-buffered tiled arrays + f32 temps)
    # within a conservative budget that fits v5e's default scoped VMEM and leaves
    # headroom on v7x's 64 MiB physical VMEM.
    budget_bytes = 12 * 1024 * 1024
    cap = max(128, budget_bytes // max(per_lane_bytes, 1))
    for cand in (8192, 4096, 2048, 1024, 512, 256, 128):
        if cand <= hw and hw % cand == 0 and cand <= cap:
            return cand
    # Small or irregular HW: single full-extent lane block.
    return hw


def _nearest_indices(out_size, in_size):
    # PyTorch F.interpolate(mode='nearest'): src = floor(dst * in / out), exact int math.
    return (jnp.arange(out_size, dtype=jnp.int32) * in_size) // out_size


def spatial_norm_2d(x, weight, bias, eps=1e-5):
    """x: (B, C, H, W); weight/bias: (B, C, hs, ws) spatial affine maps (AdaIN-style)."""
    B, C, H, W = x.shape
    _, _, hs, ws = weight.shape
    HW = H * W
    hw_small = hs * ws

    x_flat = x.reshape(B, C, HW)

    needs_interp = (hs, ws) != (H, W)
    # Very large "small" maps would make the in-kernel (hs*ws, TILE) one-hot selection
    # matrix bigger than the tile itself: pre-expand once in HBM instead.
    if needs_interp and hw_small > 2048:
        r = _nearest_indices(H, hs)
        c = _nearest_indices(W, ws)
        weight = weight[:, :, r, :][:, :, :, c]
        bias = bias[:, :, r, :][:, :, :, c]
        needs_interp = False

    compiler_params = pltpu.CompilerParams(
        dimension_semantics=("parallel", "parallel"),
        vmem_limit_bytes=32 << 20,
    )

    if needs_interp:
        r = _nearest_indices(H, hs)
        c = _nearest_indices(W, ws)
        sel = (r[:, None] * ws + c[None, :]).reshape(1, HW)            # (1, HW) int32
        w_flat = weight.reshape(B, C, hw_small)
        b_flat = bias.reshape(B, C, hw_small)

        # Per-lane bytes: (x + out) double-buffered + ~3 f32 temps + one-hot rows + sel.
        per_lane = (2 * 2 + 3) * C * 4 + hw_small * 4 + 8
        tile = _choose_tile_hw(HW, per_lane)
        grid = (B, HW // tile)

        kernel = functools.partial(_spatial_norm_interp_kernel,
                                   eps=eps, num_features=C, hw_small=hw_small)
        out = pl.pallas_call(
            kernel,
            out_shape=jax.ShapeDtypeStruct((B, C, HW), x.dtype),
            grid=grid,
            in_specs=[
                pl.BlockSpec((1, tile), lambda bi, ti: (0, ti)),            # sel (tiny)
                pl.BlockSpec((1, C, tile), lambda bi, ti: (bi, 0, ti)),     # x
                pl.BlockSpec((1, C, hw_small), lambda bi, ti: (bi, 0, 0)),  # weight
                pl.BlockSpec((1, C, hw_small), lambda bi, ti: (bi, 0, 0)),  # bias
            ],
            out_specs=pl.BlockSpec((1, C, tile), lambda bi, ti: (bi, 0, ti)),
            compiler_params=compiler_params,
        )(sel, x_flat, w_flat, b_flat)
    else:
        w_flat = weight.reshape(B, C, HW)
        b_flat = bias.reshape(B, C, HW)

        per_lane = (4 * 2 + 3) * C * 4
        tile = _choose_tile_hw(HW, per_lane)
        grid = (B, HW // tile)

        kernel = functools.partial(_spatial_norm_full_kernel, eps=eps, num_features=C)
        out = pl.pallas_call(
            kernel,
            out_shape=jax.ShapeDtypeStruct((B, C, HW), x.dtype),
            grid=grid,
            in_specs=[
                pl.BlockSpec((1, C, tile), lambda bi, ti: (bi, 0, ti)),     # x
                pl.BlockSpec((1, C, tile), lambda bi, ti: (bi, 0, ti)),     # weight
                pl.BlockSpec((1, C, tile), lambda bi, ti: (bi, 0, ti)),     # bias
            ],
            out_specs=pl.BlockSpec((1, C, tile), lambda bi, ti: (bi, 0, ti)),
            compiler_params=compiler_params,
        )(x_flat, w_flat, b_flat)

    return out.reshape(B, C, H, W)


def _reference(x, weight, bias, eps=1e-5):
    # Pure-JAX reference mirroring the PyTorch forward.
    B, C, H, W = x.shape
    _, _, hs, ws = weight.shape
    mean = jnp.mean(x, axis=1, keepdims=True)
    xn = x - mean
    std = jnp.std(xn, axis=1, keepdims=True, ddof=1)
    xs = xn / (std + eps)
    r = (jnp.arange(H) * hs) // H
    c = (jnp.arange(W) * ws) // W
    w = weight[:, :, r, :][:, :, :, c]
    b = bias[:, :, r, :][:, :, :, c]
    return w * xs + b


if __name__ == "__main__":
    key = jax.random.PRNGKey(0)
    kx, kw, kb = jax.random.split(key, 3)

    B, C, H, W = 2, 4, 16, 16
    x = jax.random.normal(kx, (B, C, H, W), dtype=jnp.float32)
    # weight/bias are assigned externally in the PyTorch module (AdaIN-style spatial
    # maps); a smaller spatial size exercises the nearest-interpolation path.
    weight = jax.random.normal(kw, (B, C, 4, 4), dtype=jnp.float32)
    bias = jax.random.normal(kb, (B, C, 4, 4), dtype=jnp.float32)

    out = spatial_norm_2d(x, weight, bias)
    out = jax.block_until_ready(out)
    ref = _reference(x, weight, bias)
    assert out.shape == (B, C, H, W)
    assert jnp.allclose(out, ref, atol=1e-4, rtol=1e-4), "mismatch vs reference (interp)"

    # Also exercise the full-resolution (no-interpolation) fast path.
    weight_full = jax.random.normal(kw, (B, C, H, W), dtype=jnp.float32)
    bias_full = jax.random.normal(kb, (B, C, H, W), dtype=jnp.float32)
    out_full = jax.block_until_ready(spatial_norm_2d(x, weight_full, bias_full))
    ref_full = _reference(x, weight_full, bias_full)
    assert jnp.allclose(out_full, ref_full, atol=1e-4, rtol=1e-4), "mismatch (full-res)"

    print("KERNEL_OK")
</pallas_src>

<mosaic_0001>
module attributes {stable_mosaic.version = 11 : i64} {
  func.func @_spatial_norm_interp_kernel(%arg0: i32, %arg1: i32, %arg2: memref<1x256xi32, #tpu.memory_space<vmem>>, %arg3: memref<1x4x256xf32, #tpu.memory_space<vmem>>, %arg4: memref<1x4x16xf32, #tpu.memory_space<vmem>>, %arg5: memref<1x4x16xf32, #tpu.memory_space<vmem>>, %arg6: memref<1x4x256xf32, #tpu.memory_space<vmem>>) attributes {dimension_semantics = [#tpu.dimension_semantics<parallel>, #tpu.dimension_semantics<parallel>], iteration_bounds = array<i64: 2, 1>, scalar_prefetch = 0 : i64, scratch_operands = 0 : i64, tpu.core_type = #tpu.core_type<tc>, window_params = [{transform_indices = @transform_0, window_bounds = array<i64: 1, 256>}, {transform_indices = @transform_1, window_bounds = array<i64: 1, 4, 256>}, {transform_indices = @transform_2, window_bounds = array<i64: 1, 4, 16>}, {transform_indices = @transform_3, window_bounds = array<i64: 1, 4, 16>}, {transform_indices = @transform_4, window_bounds = array<i64: 1, 4, 256>}]} {
    %c0 = arith.constant 0 : index
    %c0_0 = arith.constant 0 : index
    %c0_1 = arith.constant 0 : index
    %0 = vector.load %arg3[%c0, %c0_0, %c0_1] : memref<1x4x256xf32, #tpu.memory_space<vmem>>, vector<1x4x256xf32>
    %1 = vector.shape_cast %0 : vector<1x4x256xf32> to vector<4x256xf32>
    %cst = arith.constant dense<0.000000e+00> : vector<256xf32>
    %2 = vector.multi_reduction <add>, %1, %cst [0] : vector<4x256xf32> to vector<256xf32>
    %3 = vector.shape_cast %2 : vector<256xf32> to vector<1x256xf32>
    %cst_2 = arith.constant 4.000000e+00 : f32
    %4 = vector.broadcast %cst_2 : f32 to vector<1x256xf32>
    %5 = arith.divf %3, %4 : vector<1x256xf32>
    %6 = vector.broadcast %5 : vector<1x256xf32> to vector<4x256xf32>
    %7 = arith.subf %1, %6 : vector<4x256xf32>
    %8 = arith.mulf %7, %7 : vector<4x256xf32>
    %cst_3 = arith.constant dense<0.000000e+00> : vector<256xf32>
    %9 = vector.multi_reduction <add>, %8, %cst_3 [0] : vector<4x256xf32> to vector<256xf32>
    %10 = vector.shape_cast %9 : vector<256xf32> to vector<1x256xf32>
    %cst_4 = arith.constant 0.333333343 : f32
    %11 = vector.broadcast %cst_4 : f32 to vector<1x256xf32>
    %12 = arith.mulf %10, %11 : vector<1x256xf32>
    %13 = math.sqrt %12 : vector<1x256xf32>
    %cst_5 = arith.constant 9.99999974E-6 : f32
    %14 = vector.broadcast %cst_5 : f32 to vector<1x256xf32>
    %15 = arith.addf %13, %14 : vector<1x256xf32>
    %16 = vector.broadcast %15 : vector<1x256xf32> to vector<4x256xf32>
    %17 = arith.divf %7, %16 : vector<4x256xf32>
    %c0_6 = arith.constant 0 : index
    %c0_7 = arith.constant 0 : index
    %18 = vector.load %arg2[%c0_6, %c0_7] : memref<1x256xi32, #tpu.memory_space<vmem>>, vector<1x256xi32>
    %19 = tpu.iota {dimensions = array<i32: 0>} : vector<16x256xi32>
    %20 = vector.broadcast %18 : vector<1x256xi32> to vector<16x256xi32>
    %21 = arith.cmpi eq, %20, %19 : vector<16x256xi32>
    %22 = arith.extui %21 : vector<16x256xi1> to vector<16x256xi32>
    %23 = arith.sitofp %22 : vector<16x256xi32> to vector<16x256xf32>
    %c0_8 = arith.constant 0 : index
    %c0_9 = arith.constant 0 : index
    %c0_10 = arith.constant 0 : index
    %24 = vector.load %arg4[%c0_8, %c0_9, %c0_10] : memref<1x4x16xf32, #tpu.memory_space<vmem>>, vector<1x4x16xf32>
    %25 = vector.shape_cast %24 : vector<1x4x16xf32> to vector<4x16xf32>
    %cst_11 = arith.constant dense<0.000000e+00> : vector<4x256xf32>
    %26 = tpu.matmul %25, %23, %cst_11 {dimension_numbers = #tpu.dot_dimension_numbers<[1], [0], [0], [1], [0, 0, 1, 1], [], []>} : vector<4x16xf32>, vector<16x256xf32>, vector<4x256xf32> -> vector<4x256xf32>
    %c0_12 = arith.constant 0 : index
    %c0_13 = arith.constant 0 : index
    %c0_14 = arith.constant 0 : index
    %27 = vector.load %arg5[%c0_12, %c0_13, %c0_14] : memref<1x4x16xf32, #tpu.memory_space<vmem>>, vector<1x4x16xf32>
    %28 = vector.shape_cast %27 : vector<1x4x16xf32> to vector<4x16xf32>
    %cst_15 = arith.constant dense<0.000000e+00> : vector<4x256xf32>
    %29 = tpu.matmul %28, %23, %cst_15 {dimension_numbers = #tpu.dot_dimension_numbers<[1], [0], [0], [1], [0, 0, 1, 1], [], []>} : vector<4x16xf32>, vector<16x256xf32>, vector<4x256xf32> -> vector<4x256xf32>
    %30 = arith.mulf %26, %17 : vector<4x256xf32>
    %31 = arith.addf %30, %29 : vector<4x256xf32>
    %c0_16 = arith.constant 0 : index
    %c0_17 = arith.constant 0 : index
    %c0_18 = arith.constant 0 : index
    %32 = vector.load %arg6[%c0_16, %c0_17, %c0_18] : memref<1x4x256xf32, #tpu.memory_space<vmem>>, vector<1x4x256xf32>
    %33 = vector.shape_cast %32 : vector<1x4x256xf32> to vector<4x256xf32>
    %34 = vector.shape_cast %31 : vector<4x256xf32> to vector<1x4x256xf32>
    tpu.vector_store %arg6[%c0_16, %c0_17, %c0_18], %34 {strides = array<i32>} : memref<1x4x256xf32, #tpu.memory_space<vmem>>, vector<1x4x256xf32>,
    return
  }
  func.func @transform_0(%arg0: i32, %arg1: i32) -> (i32, i32) {
    %c0_i32 = arith.constant 0 : i32
    %c0_i32_0 = arith.constant 0 : i32
    return %c0_i32, %arg1 : i32, i32
  }
  func.func @transform_1(%arg0: i32, %arg1: i32) -> (i32, i32, i32) {
    %c0_i32 = arith.constant 0 : i32
    %c0_i32_0 = arith.constant 0 : i32
    return %arg0, %c0_i32, %arg1 : i32, i32, i32
  }
  func.func @transform_2(%arg0: i32, %arg1: i32) -> (i32, i32, i32) {
    %c0_i32 = arith.constant 0 : i32
    %c0_i32_0 = arith.constant 0 : i32
    %c0_i32_1 = arith.constant 0 : i32
    return %arg0, %c0_i32, %c0_i32_0 : i32, i32, i32
  }
  func.func @transform_3(%arg0: i32, %arg1: i32) -> (i32, i32, i32) {
    %c0_i32 = arith.constant 0 : i32
    %c0_i32_0 = arith.constant 0 : i32
    %c0_i32_1 = arith.constant 0 : i32
    return %arg0, %c0_i32, %c0_i32_0 : i32, i32, i32
  }
  func.func @transform_4(%arg0: i32, %arg1: i32) -> (i32, i32, i32) {
    %c0_i32 = arith.constant 0 : i32
    %c0_i32_0 = arith.constant 0 : i32
    return %arg0, %c0_i32, %arg1 : i32, i32, i32
  }
}

</mosaic_0001>

<bundles_post_ra>
// kernel: tpu_custom_call.1
= control target key start
LH: loop header
LB: loop body
LE: loop exit
PB: predicated region body
PF: predicated region fallthrough
CT: control target
= control target key end

     0   :  { %s1313_s0 = inlined_call_operand.hbm [shape: s32[1,256], index: 0, kind: input, shape index: {}]   ;;  %s1314_s1 = inlined_call_operand.hbm [shape: f32[2,4,256], index: 1, kind: input, shape index: {}]   ;;  %s1315_s2 = inlined_call_operand.hbm [shape: f32[2,4,16], index: 2, kind: input, shape index: {}]   ;;  %s1316_s3 = inlined_call_operand.hbm [shape: f32[2,4,16], index: 3, kind: input, shape index: {}]   ;;  %s1317_s4 = inlined_call_operand.hbm [shape: f32[2,4,256], index: 4, kind: output, shape index: {}]  }
   0x1   :  { %1321 = sst [smem:[#allocation19_spill]] %s1313_s0 }
   0x2   :  { %1322 = sst [smem:[#allocation20_spill]] %s1314_s1 }
   0x3   :  { %9 = vsyncpa [#allocation3], 0 }
   0x4   :  { %10 = vsyncpa [#allocation6], 0 }
   0x5   :  { %12 = vsyncpa [#allocation6 + $0x1], 0 }
   0x6   :  { %13 = vsyncpa [#allocation9], 0 }
   0x7   :  { %15 = vsyncpa [#allocation9 + $0x1], 0 }
   0x8   :  { %16 = vsyncpa [#allocation4], 0 }
   0x9   :  { %18 = vsyncpa [#allocation4 + $0x1], 0  ;;  %s1097_s15 = smov 0   ;;  %s1099_s16 = smov 0  }
   0xa   :  { %s1101_s17 = smov 0   ;;  %s1103_s18 = smov 0  }
   0xb   :  { %s1105_s19 = smov 0   ;;  %s1107_s20 = smov 0  }
   0xc LB: > { %1323 = sst [smem:[#allocation15_spill]] %s1055_s17  ;;  %s36_s21 = sadd.s32 1, %s1063_s19  ;;  %s1067_s20 = sphi %s1107_s20, %s24_s20   ;;  %s1063_s19 = sphi %s1105_s19, %s1342_s19   ;;  %s1059_s18 = sphi %s1103_s18, %s1341_s18   ;;  %s1055_s17 = sphi %s1101_s17, %s1340_s17   ;;  %s1051_s16 = sphi %s1099_s16, %s1344_s16   ;;  %s1047_s15 = sphi %s1097_s15, %s1343_s15  }
   0xd   : > { %1324 = sst [smem:[#allocation16_spill]] %s1063_s19  ;;  %s71_s22 = sadd.s32 1, %s1055_s17 }
   0xe   : > { %p38_p0 = scmp.ge.s32.totalorder %s36_s21, 2  ;;  %p78_p1 = scmp.ne.s32.totalorder %s1055_s17, %s1051_s16 }
   0xf   : > { %p79_p2 = scmp.eq.s32.totalorder %s1067_s20, 0  ;;  %p727_p3 = scmp.ge.s32.totalorder %s1067_s20, 2 }
  0x10   : > { %s1346_s21 = smov (%p38_p0, %s36_s21), 0  ;;  %p795_p5 = scmp.lt.s32.totalorder %s1067_s20, 2 }
  0x11   : > { %1325 = sst [smem:[#allocation17_spill]] %s1346_s21  ;;  %p1138_p4 = por %p79_p2, %p78_p1 }
  0x12   : > { %s66_s24 = ssub.s32 %s1063_s19, %s1346_s21  ;;  %s202_s25 = sand.u32 1, %s1067_s20  }
  0x13   : > { %p69_p6 = scmp.eq.s32.totalorder %s66_s24, 0  ;;  %s1147_s26 = sand.u32 1, %s1055_s17  }
  0x14   : > { %s762_s27 = sshll.u32 %s1063_s19, 3  ;;  %s728_s29 = sshll.u32 %s1147_s26, 3 }
  0x15   : > { %s1151_s28 = scalar_select %p69_p6, %s1055_s17, %s71_s22  }
  0x16   : > { %s1328_s1 = sld [smem:[#allocation20_spill]]  ;;  %s206_s8 = scalar_lea.vmem [#allocation5], %s728_s29 }
  0x17   : > { %1327 = sst [smem:[#allocation18_spill]] %s1151_s28  ;;  %s217_s9 = sshll.u32 %s206_s8, 4  ;;  %s218_s9 = int_to_ptr.vmem [resolvable:$true] %s217_s9 }
  0x18   : > { %p1161_p7 = pnand %p795_p5, %p1138_p4  ;;  %s1165_s11 = scalar_lea.sflag [#allocation6], %s202_s25 }
  0x19   : > { %s1171_s12 = sadd.s32 4294967295, %s1067_s20   ;;  %s724_s13 = sadd.s32 4294967294, %s1067_s20  }
  0x1a   : > { %p84_p8 = scmp.ne.s32.totalorder %s1051_s16, %s1047_s15  ;;  %p85_p9 = scmp.eq.s32.totalorder %s1171_s12, 0 }
  0x1b   : > { %p162_p10 = scmp.eq.s32.totalorder %s1171_s12, 1  ;;  %p168_p11 = scmp.eq.s32.totalorder %s724_s13, 1 }
  0x1c   : > { %s213_s6 = scalar_lea.hbm %s1328_s1, %s762_s27  ;;  %p725_p12 = scmp.ge.s32.totalorder %s1067_s20, 1 }
  0x1d   : > { %s215_s7 = sshll.u32 %s213_s6, 4  ;;  %p1181_p13 = por %p85_p9, %p84_p8  ;;  %s216_s7 = int_to_ptr.hbm [resolvable:$true] %s215_s7 }
  0x1e   : > { %783 = dma.hbm_to_vmem [thread:$0]  (!%p1161_p7), %s216_s7, 128, %s218_s9, %s1165_s11  }
  0x1f   : > { %p1188_p0 = por %p162_p10, %p78_p1  ;;  %p1192_p2 = por %p168_p11, %p84_p8 }
  0x20   : > { %p175_p4 = scmp.lt.s32.totalorder %s1067_s20, 3  ;;  %s1333_s0 = sld [smem:[#allocation19_spill]] }
  0x21   : > { %s731_s30 = sshll.u32 %s1147_s26, 2  ;;  %s1069_s5 = smov [#allocation2]  }
  0x22   : > { %p1200_p5 = pnand %p725_p12, %p175_p4  ;;  %s191_s6 = sshll.u32 %s1069_s5, 4  ;;  %s192_s6 = int_to_ptr.vmem [resolvable:$true] %s191_s6 }
  0x23   : > { %s732_s7 = sshll.u32 %s1063_s19, 2  ;;  %s228_s24 = scalar_lea.vmem [#allocation7], %s731_s30 }
  0x24   : > { %p776_p1 = pneg %p1200_p5  ;;  %s232_s13 = scalar_lea.hbm %s1315_s2, %s732_s7 }
  0x25   : > { %s236_s25 = sshll.u32 %s228_s24, 4  ;;  %s251_s21 = scalar_lea.hbm %s1316_s3, %s732_s7  ;;  %s237_s25 = int_to_ptr.vmem [resolvable:$true] %s236_s25 }
  0x26   : > { %s189_s27 = sshll.u32 %s1333_s0, 4  ;;  %p777_p6 = pnand %p776_p1, %p85_p9  ;;  %s190_s27 = int_to_ptr.hbm [resolvable:$true] %s189_s27 }
  0x27   : > { %s234_s0 = sshll.u32 %s232_s13, 4  ;;  %s247_s28 = scalar_lea.vmem [#allocation8], %s731_s30  ;;  %s235_s0 = int_to_ptr.hbm [resolvable:$true] %s234_s0 }
  0x28   : > { %779 = dma.hbm_to_vmem [thread:$0]  (!%p777_p6), %s190_s27, 32, %s192_s6, [#allocation3]  }
  0x29   : > { %786 = dma.hbm_to_vmem [thread:$0]  (!%p1161_p7), %s235_s0, 64, %s237_s25, %s1165_s11  }
  0x2a   : > { %s255_s17 = sshll.u32 %s247_s28, 4  ;;  %s253_s19 = sshll.u32 %s251_s21, 4  ;;  %s256_s17 = int_to_ptr.vmem [resolvable:$true] %s255_s17  ;;  %s254_s19 = int_to_ptr.hbm [resolvable:$true] %s253_s19 }
  0x2b   : > { %s244_s8 = scalar_lea.sflag [#allocation9], %s1147_s26  ;;  %264 = sbr.rel (%p1200_p5) target bundleno = 206 (0xce), region = 36 }
  0x2c   : > { %789 = dma.hbm_to_vmem [thread:$0]  (!%p1161_p7), %s254_s19, 64, %s256_s17, %s244_s8  }
  0x30   : > { %1030 = dma.done.wait (%p85_p9), [#allocation3], 32  }
  0x31   : > { %1032 = vsyncadd (%p85_p9), [#allocation3], 4294967264  ;;  %s271_s0 = sand.u32 1, %s1171_s12   ;;  %s1230_s1 = sand.u32 1, %s1051_s16  }
  0x32   : > { %s737_s21 = sshll.u32 %s1230_s1, 3  ;;  %s272_s26 = scalar_lea.sflag [#allocation6], %s271_s0 }
  0x33   : > { %s275_s17 = scalar_lea.vmem [#allocation5], %s737_s21 }
  0x34   : > { %1034 = dma.done.wait (%p1181_p13), %s272_s26, 192  }
  0x35   : > { %1036 = vsyncadd (%p1181_p13), %s272_s26, 4294967104  ;;  %s738_s19 = sshll.u32 %s1230_s1, 2  ;;  %s292_s10 = scalar_lea.sflag [#allocation9], %s1230_s1 }
  0x36   : > { %s285_s28 = scalar_lea.vmem [#allocation7], %s738_s19  ;;  %s295_s11 = scalar_lea.vmem [#allocation8], %s738_s19 }
  0x37   : > { %1038 = dma.done.wait (%p1181_p13), %s292_s10, 64  }
  0x38   : > { %1040 = vsyncadd (%p1181_p13), %s292_s10, 4294967232  ;;  %v441_v0 = vlaneseq  ;;  %v1070_v2 = vmov 4.0   ;;  %v440_v4 = vld [vmem:[#allocation2] sm:$0x3]  ;;  %v334_v8 = vld [vmem:[%s275_s17] sm:$0xff]  ;;  %v1071_v11 = vmov 1.0  }
  0x39   : > { %849 = vrcp.f32 %v1070_v2  ;;  %v445_v6 = vperm.slane %v440_v4, 1  ;;  %v444_v7 = vperm.slane %v440_v4, 0  ;;  %336 = vst [vmem:[#allocation1] ss:$2 sm:$0xff] %v334_v8  ;;  %vm459_vm4 = vcmask 130048   ;;  %s763_s12 = sshll.u32 %s1059_s18, 3 }
  0x3a   : > { %v442_v1 = vshrl.u32 %v441_v0, 7  ;;  %v503_v12 = vld [vmem:[%s295_s11] sm:$0xf]  ;;  %v458_v14 = vld [vmem:[%s285_s28] sm:$0xf]  ;;  %vm341_vm5 = vcmask 1043456   ;;  %s577_s29 = scalar_lea.hbm %s1317_s4, %s763_s12 }
  0x3b   : > { %s330_s30 = scalar_lea.vmem [#allocation10], %s737_s21  ;;  %s581_s7 = sshll.u32 %s577_s29, 4  ;;  %s582_s7 = int_to_ptr.hbm [resolvable:$true] %s581_s7 }
  0x3c   : > { %v443_v3 = vadd.s32 8, %v442_v1  ;;  %vm1245_vm2 = vcmp.eq.s32.totalorder %v445_v6, %v442_v1  ;;  %vm1249_vm3 = vcmp.eq.s32.totalorder %v444_v7, %v442_v1  ;;  %s579_s6 = sshll.u32 %s330_s30, 4  ;;  %s564_s18 = scalar_lea.sflag [#allocation4], %s1230_s1  ;;  %s580_s6 = int_to_ptr.vmem [resolvable:$true] %s579_s6 }
  0x3d   : > { %s991_s9 = sshra.s32 %s582_s7, 4  ;;  %s997_s5 = scalar_lea.hbm %s1317_s4, 16  ;;  %s992_s9 = int_to_ptr.hbm [resolvable:$true] %s991_s9 }
  0x3e   : > { %vm449_vm0 = vcmp.eq.s32.totalorder %v445_v6, %v443_v3  ;;  %vm448_vm1 = vcmp.eq.s32.totalorder %v444_v7, %v443_v3  ;;  %s993_s13 = scalar_lea.hbm %s992_s9, 8  ;;  %p998_p10 = scmp.lt.s32.totalorder %s992_s9, %s1317_s4 }
  0x3f   : > { %v850_v5 = vpop.eup %849  ;;  %754 = vmatpush.msk.msra.mxu3 %vm449_vm0, %v1071_v11  ;;  %751 = vmatpush.msk.msra.mxu2 %vm448_vm1, %v1071_v11  ;;  %p994_p7 = scmp.ne.s32.totalorder %s992_s9, %s993_s13  ;;  %p999_p11 = scmp.lt.s32.totalorder %s997_s5, %s993_s13 }
  0x40   : > { %v357_v13 = vmul.f32 4.0, %v850_v5  ;;  %748 = vmatpush.msk.msra.mxu1 %vm449_vm0, %v1071_v11  ;;  %745 = vmatpush.msk.msra.mxu0 %vm448_vm1, %v1071_v11  ;;  %v337_v16 = vld.sshfl [vmem:[#allocation1] sm:$0xff pattern:$0x75316420]  ;;  %vm361_vm6 = vweird.f32 %v850_v5 }
  0x41   : > { %755 = vmatpush.msk.msra.mxu3 %vm1245_vm2, %v1071_v11  ;;  %752 = vmatpush.msk.msra.mxu2 %vm1249_vm3, %v1071_v11  ;;  %v338_v17 = vld.sshfl [vmem:[#allocation1 + $0x8] sm:$0xff pattern:$0x75316420]  ;;  %v342_v18 = vsel %vm341_vm5, %v337_v16, 0.0  ;;  %p995_p8 = pnand %p994_p7, %p1188_p0  ;;  %p1000_p12 = por %p999_p11, %p998_p10 }
  0x42   : > { %756 = vmatmul.msk.f32.vlgmr.msra.gmra.mxu3 %vm459_vm4, %v503_v12  ;;  %753 = vmatmul.msk.f32.vlgmr.msra.gmra.mxu2 %vm459_vm4, %v503_v12  ;;  %v358_v15 = vsub.f32 1.0, %v357_v13  ;;  %v349_v19 = vsel %vm341_vm5, %v338_v17, 0.0  ;;  %v343_v20 = vrot.slane %v342_v18, 4 }
  0x43   : > { %749 = vmatpush.msk.msra.mxu1 %vm1245_vm2, %v1071_v11  ;;  %746 = vmatpush.msk.msra.mxu0 %vm1249_vm3, %v1071_v11  ;;  %v350_v21 = vrot.slane %v349_v19, 4  ;;  %p996_p9 = pneg %p995_p8 }
  0x44   : > { %750 = vmatmul.msk.f32.vlgmr.msra.gmra.mxu1 %vm459_vm4, %v458_v14  ;;  %747 = vmatmul.msk.f32.vlgmr.msra.gmra.mxu0 %vm459_vm4, %v458_v14  ;;  %v359_v22 = vmul.f32 %v850_v5, %v358_v15  ;;  %v344_v23 = vadd.f32 %v343_v20, %v342_v18 }
  0x45   : > { %v351_v24 = vadd.f32 %v350_v21, %v349_v19  ;;  %p1001_p13 = pnand %p1000_p12, %p996_p9 }
  0x46   : > { %v345_v25 = vrot.slane %v344_v23, 2  ;;  %v360_v27 = vadd.f32 %v850_v5, %v359_v22 }
  0x47   : > { %v352_v26 = vrot.slane %v351_v24, 2 }
  0x48   : > { %v346_v28 = vadd.f32 %v345_v25, %v344_v23  ;;  %v362_v32 = vsel %vm361_vm6, %v850_v5, %v360_v27 }
  0x49   : > { %v353_v29 = vadd.f32 %v352_v26, %v351_v24 }
  0x4a   : > { %v347_v30 = vrot.slane %v346_v28, 1 }
  0x4b   : > { %v354_v31 = vrot.slane %v353_v29, 1 }
  0x4c   : > { %v348_v33 = vadd.f32 %v347_v30, %v346_v28 }
  0x4d   : > { %v355_v34 = vadd.f32 %v354_v31, %v353_v29 }
  0x4e   : > { %v363_v35 = vmul.f32 %v362_v32, %v348_v33 }
  0x4f   : > { %v364_v36 = vmul.f32 %v362_v32, %v355_v34 }
  0x51   : > { %v367_v37 = vrot.slane %v364_v36, 4 }
  0x53   : > { %v368_v38 = vsel %vm341_vm5, %v363_v35, %v367_v37 }
  0x54   : > { %v1264_v39 = vsub.f32 %v334_v8, %v368_v38 }
  0x56   : > { %v371_v40 = vmul.f32 %v1264_v39, %v1264_v39 }
  0x58   : > { %373 = vst [vmem:[#allocation1] ss:$2 sm:$0xff] %v371_v40 }
  0x5f   : > { %v374_v41 = vld.sshfl [vmem:[#allocation1] sm:$0xff pattern:$0x75316420]  ;;  %v375_v42 = vld.sshfl [vmem:[#allocation1 + $0x8] sm:$0xff pattern:$0x75316420] }
  0x60   : > { %v378_v43 = vsel %vm341_vm5, %v374_v41, 0.0  ;;  %v385_v44 = vsel %vm341_vm5, %v375_v42, 0.0 }
  0x61   : > { %v379_v45 = vrot.slane %v378_v43, 4  ;;  %v386_v46 = vrot.slane %v385_v44, 4 }
  0x63   : > { %v380_v47 = vadd.f32 %v379_v45, %v378_v43  ;;  %v387_v48 = vadd.f32 %v386_v46, %v385_v44 }
  0x65   : > { %v381_v49 = vrot.slane %v380_v47, 2  ;;  %v388_v50 = vrot.slane %v387_v48, 2 }
  0x67   : > { %v382_v51 = vadd.f32 %v381_v49, %v380_v47  ;;  %v389_v52 = vadd.f32 %v388_v50, %v387_v48 }
  0x69   : > { %v383_v53 = vrot.slane %v382_v51, 1  ;;  %v390_v54 = vrot.slane %v389_v52, 1 }
  0x6b   : > { %v384_v55 = vadd.f32 %v383_v53, %v382_v51  ;;  %v391_v56 = vadd.f32 %v390_v54, %v389_v52 }
  0x6d   : > { %v392_v57 = vmul.f32 0.33333334, %v384_v55  ;;  %v393_v58 = vmul.f32 0.33333334, %v391_v56 }
  0x6f   : > { %851 = vrsqrt.f32 %v392_v57  ;;  %vm401_vm7 = vcmp.eq.f32.partialorder %v392_v57, inf  ;;  %v404_v6 = vand.u32 2147483648, %v392_v57  ;;  %vm403_vm8 = vcmp.eq.f32.partialorder %v392_v57, 0.0 }
  0x70   : > { %853 = vrsqrt.f32 %v393_v58  ;;  %vm413_vm9 = vcmp.eq.f32.partialorder %v393_v58, inf  ;;  %v416_v9 = vand.u32 2147483648, %v393_v58  ;;  %vm415_vm10 = vcmp.eq.f32.partialorder %v393_v58, 0.0 }
  0x75   : > { %v852_v59 = vpop.eup %851 }
  0x76   : > { %v854_v60 = vpop.eup %853  ;;  %v395_v61 = vmul.f32 %v852_v59, %v392_v57 }
  0x77   : > { %v407_v62 = vmul.f32 %v854_v60, %v393_v58 }
  0x78   : > { %v396_v63 = vmul.f32 %v852_v59, %v395_v61 }
  0x79   : > { %v408_v0 = vmul.f32 %v854_v60, %v407_v62 }
  0x7a   : > { %v397_v1 = vmul.f32 0.5, %v396_v63 }
  0x7b   : > { %v409_v2 = vmul.f32 0.5, %v408_v0 }
  0x7c   : > { %v398_v3 = vsub.f32 1.5, %v397_v1 }
  0x7d   : > { %v410_v4 = vsub.f32 1.5, %v409_v2 }
  0x7e   : > { %v399_v5 = vmul.f32 %v852_v59, %v398_v3 }
  0x7f   : > { %v411_v7 = vmul.f32 %v854_v60, %v410_v4 }
  0x80   : > { %v400_v8 = vmul.f32 %v399_v5, %v392_v57 }
  0x81   : > { %v412_v10 = vmul.f32 %v411_v7, %v393_v58 }
  0x82   : > { %v402_v11 = vsel %vm401_vm7, %v392_v57, %v400_v8 }
  0x83   : > { %v405_v12 = vsel %vm403_vm8, %v404_v6, %v402_v11  ;;  %v414_v13 = vsel %vm413_vm9, %v393_v58, %v412_v10 }
  0x84   : > { %v417_v14 = vsel %vm415_vm10, %v416_v9, %v414_v13  ;;  %v418_v15 = vadd.f32 1e-05, %v405_v12 }
  0x85   : > { %v419_v16 = vadd.f32 1e-05, %v417_v14 }
  0x87   : > { %v422_v17 = vrot.slane %v419_v16, 4 }
  0x89   : > { %v423_v18 = vsel %vm341_vm5, %v418_v15, %v422_v17 }
  0x8a   : > { %855 = vrcp.f32 %v423_v18  ;;  %v436_v21 = vand.u32 2147483648, %v423_v18  ;;  %vm430_vm11 = vweird.f32 %v423_v18  ;;  %v434_v23 = vand.u32 2147483647, %v423_v18 }
  0x8c   : > { %v437_v25 = vor.u32 1.1754944e-38, %v436_v21  ;;  %vm435_vm14 = vcmp.eq.f32.partialorder %v434_v23, 8.507059e+37 }
  0x90   : > { %v856_v19 = vpop.eup %855 }
  0x91   : > { %v426_v20 = vmul.f32 %v856_v19, %v423_v18  ;;  %vm431_vm12 = vweird.f32 %v856_v19 }
  0x92   : > { %vm432_vm13 = vmor %vm430_vm11, %vm431_vm12 }
  0x93   : > { %v427_v22 = vsub.f32 1.0, %v426_v20 }
  0x95   : > { %v428_v24 = vmul.f32 %v856_v19, %v427_v22 }
  0x97   : > { %v429_v26 = vadd.f32 %v856_v19, %v428_v24 }
  0x99   : > { %v433_v27 = vsel %vm432_vm13, %v856_v19, %v429_v26 }
  0x9a   : > { %v438_v28 = vsel %vm435_vm14, %v437_v25, %v433_v27 }
  0x9b   : > { %v439_v29 = vmul.f32 %v438_v28, %v1264_v39 }
  0x9d   : > { %548 = vst [vmem:[#allocation1] ss:$2 sm:$0xff] %v439_v29 }
  0xa4   : > { %v550_v30 = vld.sshfl [vmem:[#allocation1 + $0x8] sm:$0xff pattern:$0x75316420]  ;;  %v549_v31 = vld.sshfl [vmem:[#allocation1] sm:$0xff pattern:$0x75316420] }
  0xc1   : > { %v500_v32 = vpop.f32.mrf.mxu1  ;;  %v480_v33 = vpop.f32.mrf.mxu0 }
  0xc2   : > { %v554_v34 = vmul.f32 %v550_v30, %v500_v32  ;;  %v553_v35 = vmul.f32 %v549_v31, %v480_v33 }
  0xc5   : > { %v544_v36 = vpop.f32.mrf.mxu3  ;;  %v524_v37 = vpop.f32.mrf.mxu2 }
  0xc6   : > { %v556_v38 = vadd.f32 %v554_v34, %v544_v36  ;;  %v555_v40 = vadd.f32 %v553_v35, %v524_v37 }
  0xc8   : > { %v559_v39 = vrot.slane %v556_v38, 4 }
  0xca   : > { %v560_v41 = vsel %vm341_vm5, %v555_v40, %v559_v39 }
  0xcb   : > { %562 = vst [vmem:[%s330_s30] sm:$0xff] %v560_v41 }
  0xcc   : > { %1004 = shalt.err (!%p1001_p13)
}
  0xcd   : > { %774 = dma.vmem_to_hbm [thread:$0]  (%p1188_p0), %s580_s6, 128, %s582_s7, %s564_s18  }
  0xce PF: > { %s593_s1 = sand.u32 1, %s1047_s15   ;;  %p791_p4 = pnand %p727_p3, %p1192_p2 }
  0xcf   : > { %s594_s21 = scalar_lea.sflag [#allocation4], %s593_s1 }
  0xd0   : > { %p792_p5 = pneg %p791_p4 }
  0xd2   : > { %1042 = dma.done.wait (%p792_p5), %s594_s21, 128  }
  0xd3   : > { %1044 = vsyncadd (%p792_p5), %s594_s21, 4294967168  ;;  %s24_s20 = sadd.s32 1, %s1067_s20   ;;  %s1339_s26 = sld [smem:[#allocation15_spill]] }
  0xd4   : > { %p21_p1 = scmp.ge.s32.totalorder %s24_s20, 4   ;;  %s1340_s17 = sld [smem:[#allocation18_spill]] }
  0xd5   : > { %s1341_s18 = sld [smem:[#allocation16_spill]]  ;;  %s1343_s15 = smov %s1051_s16 }
  0xd6   : > { %s1342_s19 = sld [smem:[#allocation17_spill]]  ;;  %23 = sbr.rel (!%p21_p1) target bundleno = 12 (0xc), region = 111 }
  0xd9   : > { %s1344_s16 = smov %s1339_s26 }
  0xdb   :  { %600 = vsyncpa [#allocation3], 1 }
  0xdc   :  { %602 = vsyncpa [#allocation3 + $0x1], 1 }
  0xdd   :  { %603 = vsyncpa [#allocation6], 1 }
  0xde   :  { %605 = vsyncpa [#allocation6 + $0x1], 1 }
  0xdf   :  { %606 = vsyncpa [#allocation9], 1 }
  0xe0   :  { %608 = vsyncpa [#allocation9 + $0x1], 1 }
  0xe1   :  { %609 = vsyncpa [#allocation4], 1 }
  0xe2   :  { %611 = vsyncpa [#allocation4 + $0x1], 1 }

</bundles_post_ra>
